<compile_context>
chip_gen: v5e
topology: v5e:2x2
jax: 0.10.0
libtpu: 0.0.40
codegen_flags: <defaults>
</compile_context>

<pallas_src>
import functools

import jax
import jax.numpy as jnp
from jax.experimental import pallas as pl
from jax.experimental.pallas import tpu as pltpu


def dqn_kernel(x_ref, w1_ref, b1_ref, w2_ref, b2_ref, w3_ref, b3_ref, o_ref):
    # Cast the activation tile to bf16 on the VPU; weights arrive already bf16.
    # All matmuls accumulate in f32 on the MXU.
    x = x_ref[...].astype(jnp.bfloat16)

    # fc1 + relu (f32 bias-add / relu on the VPU)
    h1 = jnp.dot(x, w1_ref[...], preferred_element_type=jnp.float32)
    h1 = jnp.maximum(h1 + b1_ref[...], 0.0)

    # fc2 + relu
    h2 = jnp.dot(h1.astype(jnp.bfloat16), w2_ref[...],
                 preferred_element_type=jnp.float32)
    h2 = jnp.maximum(h2 + b2_ref[...], 0.0)

    # fc3 (no activation)
    out = jnp.dot(h2.astype(jnp.bfloat16), w3_ref[...],
                  preferred_element_type=jnp.float32)
    o_ref[...] = (out + b3_ref[...]).astype(o_ref.dtype)


@functools.partial(jax.jit, static_argnames=("block_b",))
def dqn_forward(x, w1, b1, w2, b2, w3, b3, *, block_b=256):
    B, in_dim = x.shape
    out_dim = w3.shape[1]

    # Batch tile: fill MXU rows when the batch is large; for small batches use
    # the full array as a single block (block == full dims keeps the (8,128)
    # constraint trivially satisfied).
    tb = B if B <= block_b else block_b
    nb = pl.cdiv(B, tb)

    # bf16 weights for the MXU (one-time cast); biases stay f32.
    w1b = w1.astype(jnp.bfloat16)
    w2b = w2.astype(jnp.bfloat16)
    w3b = w3.astype(jnp.bfloat16)

    in_specs = [
        # x: tiled along the batch grid axis (double-buffered by Pallas).
        pl.BlockSpec((tb, in_dim), lambda i: (i, 0)),
        # weights / biases: constant block index -> DMA'd once, VMEM-resident.
        pl.BlockSpec(w1b.shape, lambda i: (0, 0)),
        pl.BlockSpec(b1.shape, lambda i: (0, 0)),
        pl.BlockSpec(w2b.shape, lambda i: (0, 0)),
        pl.BlockSpec(b2.shape, lambda i: (0, 0)),
        pl.BlockSpec(w3b.shape, lambda i: (0, 0)),
        pl.BlockSpec(b3.shape, lambda i: (0, 0)),
    ]
    out_specs = pl.BlockSpec((tb, out_dim), lambda i: (i, 0))

    return pl.pallas_call(
        dqn_kernel,
        out_shape=jax.ShapeDtypeStruct((B, out_dim), jnp.float32),
        grid=(nb,),
        in_specs=in_specs,
        out_specs=out_specs,
        compiler_params=pltpu.CompilerParams(
            # Batch tiles are independent: shard across both TCs on v7x.
            dimension_semantics=("parallel",)),
    )(x, w1b, b1, w2b, b2, w3b, b3)


def init_params(key, input_dim, hidden_dim, output_dim):
    """Deterministic PyTorch-style (uniform +/- 1/sqrt(fan_in)) init."""
    ks = jax.random.split(key, 6)

    def linear(kw, kb, fan_in, fan_out):
        bound = 1.0 / jnp.sqrt(fan_in)
        # stored as [in, out] (transposed vs. torch's [out, in])
        w = jax.random.uniform(kw, (fan_in, fan_out), jnp.float32, -bound, bound)
        b = jax.random.uniform(kb, (1, fan_out), jnp.float32, -bound, bound)
        return w, b

    w1, b1 = linear(ks[0], ks[1], input_dim, hidden_dim)
    w2, b2 = linear(ks[2], ks[3], hidden_dim, hidden_dim)
    w3, b3 = linear(ks[4], ks[5], hidden_dim, output_dim)
    return w1, b1, w2, b2, w3, b3


def reference_forward(x, w1, b1, w2, b2, w3, b3):
    # Matches the kernel's numerics: bf16 matmul inputs, f32 accumulation.
    bf = jnp.bfloat16
    h1 = jnp.dot(x.astype(bf), w1.astype(bf),
                 preferred_element_type=jnp.float32) + b1
    h1 = jnp.maximum(h1, 0.0)
    h2 = jnp.dot(h1.astype(bf), w2.astype(bf),
                 preferred_element_type=jnp.float32) + b2
    h2 = jnp.maximum(h2, 0.0)
    return jnp.dot(h2.astype(bf), w3.astype(bf),
                   preferred_element_type=jnp.float32) + b3


if __name__ == "__main__":
    key = jax.random.PRNGKey(0)
    k_x, k_p = jax.random.split(key)

    batch = 8
    input_dim = 32    # e.g. state dimension
    hidden_dim = 128  # fixed by the module definition
    output_dim = 8    # e.g. number of actions

    x = jax.random.normal(k_x, (batch, input_dim), jnp.float32)
    params = init_params(k_p, input_dim, hidden_dim, output_dim)

    out = dqn_forward(x, *params)
    out = jax.block_until_ready(out)

    ref = reference_forward(x, *params)
    assert out.shape == (batch, output_dim), out.shape
    assert jnp.allclose(out, ref, atol=1e-2, rtol=1e-2), "mismatch vs reference"

    print("KERNEL_OK")
</pallas_src>

<mosaic_0001>
module attributes {stable_mosaic.version = 11 : i64} {
  func.func @dqn_kernel(%arg0: i32, %arg1: memref<8x32xf32, #tpu.memory_space<vmem>>, %arg2: memref<32x128xbf16, #tpu.memory_space<vmem>>, %arg3: memref<1x128xf32, #tpu.memory_space<vmem>>, %arg4: memref<128x128xbf16, #tpu.memory_space<vmem>>, %arg5: memref<1x128xf32, #tpu.memory_space<vmem>>, %arg6: memref<128x8xbf16, #tpu.memory_space<vmem>>, %arg7: memref<1x8xf32, #tpu.memory_space<vmem>>, %arg8: memref<8x8xf32, #tpu.memory_space<vmem>>) attributes {dimension_semantics = [#tpu.dimension_semantics<parallel>], iteration_bounds = array<i64: 1>, scalar_prefetch = 0 : i64, scratch_operands = 0 : i64, tpu.core_type = #tpu.core_type<tc>, window_params = [{transform_indices = @transform_0, window_bounds = array<i64: 8, 32>}, {pipeline_mode = #tpu.pipeline_mode<synchronous>, transform_indices = @transform_1, window_bounds = array<i64: 32, 128>}, {pipeline_mode = #tpu.pipeline_mode<synchronous>, transform_indices = @transform_2, window_bounds = array<i64: 1, 128>}, {pipeline_mode = #tpu.pipeline_mode<synchronous>, transform_indices = @transform_3, window_bounds = array<i64: 128, 128>}, {pipeline_mode = #tpu.pipeline_mode<synchronous>, transform_indices = @transform_4, window_bounds = array<i64: 1, 128>}, {pipeline_mode = #tpu.pipeline_mode<synchronous>, transform_indices = @transform_5, window_bounds = array<i64: 128, 8>}, {pipeline_mode = #tpu.pipeline_mode<synchronous>, transform_indices = @transform_6, window_bounds = array<i64: 1, 8>}, {transform_indices = @transform_7, window_bounds = array<i64: 8, 8>}]} {
    %c0 = arith.constant 0 : index
    %c0_0 = arith.constant 0 : index
    %0 = vector.load %arg1[%c0, %c0_0] : memref<8x32xf32, #tpu.memory_space<vmem>>, vector<8x32xf32>
    %1 = arith.truncf %0 : vector<8x32xf32> to vector<8x32xbf16>
    %c0_1 = arith.constant 0 : index
    %c0_2 = arith.constant 0 : index
    %2 = vector.load %arg2[%c0_1, %c0_2] : memref<32x128xbf16, #tpu.memory_space<vmem>>, vector<32x128xbf16>
    %cst = arith.constant dense<0.000000e+00> : vector<8x128xf32>
    %3 = tpu.matmul %1, %2, %cst {dimension_numbers = #tpu.dot_dimension_numbers<[1], [0], [0], [1], [0, 0, 1, 1], [], []>} : vector<8x32xbf16>, vector<32x128xbf16>, vector<8x128xf32> -> vector<8x128xf32>
    %c0_3 = arith.constant 0 : index
    %c0_4 = arith.constant 0 : index
    %4 = vector.load %arg3[%c0_3, %c0_4] : memref<1x128xf32, #tpu.memory_space<vmem>>, vector<1x128xf32>
    %5 = vector.broadcast %4 : vector<1x128xf32> to vector<8x128xf32>
    %6 = arith.addf %3, %5 : vector<8x128xf32>
    %cst_5 = arith.constant 0.000000e+00 : f32
    %7 = vector.broadcast %cst_5 : f32 to vector<8x128xf32>
    %8 = arith.maximumf %6, %7 : vector<8x128xf32>
    %9 = arith.truncf %8 : vector<8x128xf32> to vector<8x128xbf16>
    %c0_6 = arith.constant 0 : index
    %c0_7 = arith.constant 0 : index
    %10 = vector.load %arg4[%c0_6, %c0_7] : memref<128x128xbf16, #tpu.memory_space<vmem>>, vector<128x128xbf16>
    %cst_8 = arith.constant dense<0.000000e+00> : vector<8x128xf32>
    %11 = tpu.matmul %9, %10, %cst_8 {dimension_numbers = #tpu.dot_dimension_numbers<[1], [0], [0], [1], [0, 0, 1, 1], [], []>} : vector<8x128xbf16>, vector<128x128xbf16>, vector<8x128xf32> -> vector<8x128xf32>
    %c0_9 = arith.constant 0 : index
    %c0_10 = arith.constant 0 : index
    %12 = vector.load %arg5[%c0_9, %c0_10] : memref<1x128xf32, #tpu.memory_space<vmem>>, vector<1x128xf32>
    %13 = vector.broadcast %12 : vector<1x128xf32> to vector<8x128xf32>
    %14 = arith.addf %11, %13 : vector<8x128xf32>
    %cst_11 = arith.constant 0.000000e+00 : f32
    %15 = vector.broadcast %cst_11 : f32 to vector<8x128xf32>
    %16 = arith.maximumf %14, %15 : vector<8x128xf32>
    %17 = arith.truncf %16 : vector<8x128xf32> to vector<8x128xbf16>
    %c0_12 = arith.constant 0 : index
    %c0_13 = arith.constant 0 : index
    %18 = vector.load %arg6[%c0_12, %c0_13] : memref<128x8xbf16, #tpu.memory_space<vmem>>, vector<128x8xbf16>
    %cst_14 = arith.constant dense<0.000000e+00> : vector<8x8xf32>
    %19 = tpu.matmul %17, %18, %cst_14 {dimension_numbers = #tpu.dot_dimension_numbers<[1], [0], [0], [1], [0, 0, 1, 1], [], []>} : vector<8x128xbf16>, vector<128x8xbf16>, vector<8x8xf32> -> vector<8x8xf32>
    %c0_15 = arith.constant 0 : index
    %c0_16 = arith.constant 0 : index
    %20 = vector.load %arg7[%c0_15, %c0_16] : memref<1x8xf32, #tpu.memory_space<vmem>>, vector<1x8xf32>
    %21 = vector.broadcast %20 : vector<1x8xf32> to vector<8x8xf32>
    %22 = arith.addf %19, %21 : vector<8x8xf32>
    %c0_17 = arith.constant 0 : index
    %c0_18 = arith.constant 0 : index
    %23 = vector.load %arg8[%c0_17, %c0_18] : memref<8x8xf32, #tpu.memory_space<vmem>>, vector<8x8xf32>
    tpu.vector_store %arg8[%c0_17, %c0_18], %22 {strides = array<i32>} : memref<8x8xf32, #tpu.memory_space<vmem>>, vector<8x8xf32>,
    return
  }
  func.func @transform_0(%arg0: i32) -> (i32, i32) {
    %c0_i32 = arith.constant 0 : i32
    %c0_i32_0 = arith.constant 0 : i32
    return %arg0, %c0_i32 : i32, i32
  }
  func.func @transform_1(%arg0: i32) -> (i32, i32) {
    %c0_i32 = arith.constant 0 : i32
    %c0_i32_0 = arith.constant 0 : i32
    %c0_i32_1 = arith.constant 0 : i32
    return %c0_i32, %c0_i32_0 : i32, i32
  }
  func.func @transform_2(%arg0: i32) -> (i32, i32) {
    %c0_i32 = arith.constant 0 : i32
    %c0_i32_0 = arith.constant 0 : i32
    %c0_i32_1 = arith.constant 0 : i32
    return %c0_i32, %c0_i32_0 : i32, i32
  }
  func.func @transform_3(%arg0: i32) -> (i32, i32) {
    %c0_i32 = arith.constant 0 : i32
    %c0_i32_0 = arith.constant 0 : i32
    %c0_i32_1 = arith.constant 0 : i32
    return %c0_i32, %c0_i32_0 : i32, i32
  }
  func.func @transform_4(%arg0: i32) -> (i32, i32) {
    %c0_i32 = arith.constant 0 : i32
    %c0_i32_0 = arith.constant 0 : i32
    %c0_i32_1 = arith.constant 0 : i32
    return %c0_i32, %c0_i32_0 : i32, i32
  }
  func.func @transform_5(%arg0: i32) -> (i32, i32) {
    %c0_i32 = arith.constant 0 : i32
    %c0_i32_0 = arith.constant 0 : i32
    %c0_i32_1 = arith.constant 0 : i32
    return %c0_i32, %c0_i32_0 : i32, i32
  }
  func.func @transform_6(%arg0: i32) -> (i32, i32) {
    %c0_i32 = arith.constant 0 : i32
    %c0_i32_0 = arith.constant 0 : i32
    %c0_i32_1 = arith.constant 0 : i32
    return %c0_i32, %c0_i32_0 : i32, i32
  }
  func.func @transform_7(%arg0: i32) -> (i32, i32) {
    %c0_i32 = arith.constant 0 : i32
    %c0_i32_0 = arith.constant 0 : i32
    return %arg0, %c0_i32 : i32, i32
  }
}

</mosaic_0001>

<bundles_post_ra>
// kernel: dqn_forward.1
= control target key start
LH: loop header
LB: loop body
LE: loop exit
PB: predicated region body
PF: predicated region fallthrough
CT: control target
= control target key end

     0   :  { %s482_s0 = inlined_call_operand.vmem [shape: f32[8,32], index: 0, kind: input, shape index: {}]   ;;  %s483_s1 = inlined_call_operand.vmem [shape: bf16[32,128], index: 1, kind: input, shape index: {}]   ;;  %s484_s2 = inlined_call_operand.vmem [shape: f32[1,128], index: 2, kind: input, shape index: {}]   ;;  %s485_s3 = inlined_call_operand.vmem [shape: bf16[128,128], index: 3, kind: input, shape index: {}]   ;;  %s486_s4 = inlined_call_operand.vmem [shape: f32[1,128], index: 4, kind: input, shape index: {}]   ;;  %s487_s5 = inlined_call_operand.vmem [shape: bf16[128,8], index: 5, kind: input, shape index: {}]   ;;  %s488_s6 = inlined_call_operand.vmem [shape: f32[1,8], index: 6, kind: input, shape index: {}]   ;;  %s489_s7 = inlined_call_operand.hbm [shape: f32[8,8], index: 7, kind: output, shape index: {}]  }
   0x1   :  { %v325_v0 = vld [vmem:[%s483_s1 + $0x8] sm:$0xff]  ;;  %v333_v1 = vld [vmem:[%s485_s3 + $0x38] sm:$0xff]  ;;  %v324_v2 = vld [vmem:[%s483_s1] sm:$0xff] }
   0x2   :  { %60 = vmatpush.bf16.msra.mxu0 %v325_v0  ;;  %v28_v3 = vld [vmem:[%s482_s0] sm:$0xff]  ;;  %137 = vmatpush.bf16.msra.mxu1 %v333_v1  ;;  %v332_v4 = vld [vmem:[%s485_s3 + $0x30] sm:$0xff] }
   0x3   :  { %12 = vsyncpa [#allocation3], 0  ;;  %v29_v5 = vpack.c.bf16 %v28_v3, %v28_v3  ;;  %vm50_vm0 = vcmask 261120   ;;  %v331_v6 = vld [vmem:[%s485_s3 + $0x28] sm:$0xff]  ;;  %v330_v7 = vld [vmem:[%s485_s3 + $0x20] sm:$0xff]  ;;  %s372_s16 = smov [#allocation2]  }
   0x4   :  { %v329_v8 = vld [vmem:[%s485_s3 + $0x18] sm:$0xff]  ;;  %v328_v9 = vld [vmem:[%s485_s3 + $0x10] sm:$0xff]  ;;  %v327_v10 = vld [vmem:[%s485_s3 + $0x8] sm:$0xff]  ;;  %s240_s17 = sshll.u32 %s372_s16, 4  ;;  %vm233_vm1 = vcmask 64512   ;;  %s241_s17 = int_to_ptr.vmem [resolvable:$true] %s240_s17 }
   0x5   :  { %v326_v11 = vld [vmem:[%s485_s3] sm:$0xff]  ;;  %v341_v12 = vld [vmem:[%s487_s5 + $0x38] sm:$0xff]  ;;  %v340_v13 = vld [vmem:[%s487_s5 + $0x30] sm:$0xff] }
   0x6   :  { %61 = vmatpush.bf16.msra.mxu0 %v324_v2  ;;  %138 = vmatpush.bf16.msra.mxu1 %v332_v4  ;;  %v339_v14 = vld [vmem:[%s487_s5 + $0x28] sm:$0xff]  ;;  %v338_v15 = vld [vmem:[%s487_s5 + $0x20] sm:$0xff]  ;;  %v337_v16 = vld [vmem:[%s487_s5 + $0x18] sm:$0xff] }
   0x7   :  { %220 = vmatpush.bf16.msra.mxu2 %v341_v12  ;;  %v336_v17 = vld [vmem:[%s487_s5 + $0x10] sm:$0xff]  ;;  %v343_v18 = vld [vmem:[%s484_s2] ss:$0 sm:$0xff]  ;;  %v335_v24 = vld [vmem:[%s487_s5 + $0x8] sm:$0xff] }
   0x8   :  { %v334_v25 = vld [vmem:[%s487_s5] sm:$0xff]  ;;  %s242_s5 = sshll.u32 %s489_s7, 4  ;;  %s243_s5 = int_to_ptr.hbm [resolvable:$true] %s242_s5 }
   0x9   :  { %259 = vmatmul.msk.bf16.vlgmr.msra.gmra.mxu0 %vm50_vm0, %v29_v5  ;;  %v344_v26 = vld [vmem:[%s486_s4] ss:$0 sm:$0xff] }
   0xa   :  { %139 = vmatpush.bf16.msra.mxu1 %v331_v6  ;;  %v345_v32 = vld [vmem:[%s488_s6] ss:$0 sm:$0xff] }
   0xb   :  { %221 = vmatpush.bf16.msra.mxu2 %v340_v13 }
   0xe   :  { %140 = vmatpush.bf16.msra.mxu1 %v330_v7 }
   0xf   :  { %222 = vmatpush.bf16.msra.mxu2 %v339_v14 }
  0x12   :  { %141 = vmatpush.bf16.msra.mxu1 %v329_v8 }
  0x13   :  { %223 = vmatpush.bf16.msra.mxu2 %v338_v15 }
  0x16   :  { %142 = vmatpush.bf16.msra.mxu1 %v328_v9 }
  0x17   :  { %224 = vmatpush.bf16.msra.mxu2 %v337_v16 }
  0x1a   :  { %143 = vmatpush.bf16.msra.mxu1 %v327_v10 }
  0x1b   :  { %225 = vmatpush.bf16.msra.mxu2 %v336_v17 }
  0x1e   :  { %144 = vmatpush.bf16.msra.mxu1 %v326_v11 }
  0x1f   :  { %226 = vmatpush.bf16.msra.mxu2 %v335_v24 }
  0x23   :  { %227 = vmatpush.bf16.msra.mxu2 %v334_v25 }
  0x86   :  { %v63_v19 = vpop.f32.mrf.mxu0 }
  0x87   :  { %v64_v20 = vadd.f32 %v343_v18, %v63_v19 }
  0x89   :  { %v67_v21 = vmax.f32 %v64_v20, 0.0 }
  0x8b   :  { %v68_v22 = vpack.c.bf16 %v67_v21, %v67_v21 }
  0x8d   :  { %145 = vmatmul.bf16.vlgmr.msra.gmra.mxu1 %v68_v22 }
  0x8e   :  { %v65_v23 = vpop.f32.mrf.mxu0 }
 0x10a   :  { %v146_v27 = vpop.f32.mrf.mxu1 }
 0x10b   :  { %v147_v28 = vadd.f32 %v344_v26, %v146_v27 }
 0x10d   :  { %v150_v29 = vmax.f32 %v147_v28, 0.0 }
 0x10f   :  { %v151_v30 = vpack.c.bf16 %v150_v29, %v150_v29 }
 0x111   :  { %228 = vmatmul.bf16.vlgmr.msra.gmra.mxu2 %v151_v30 }
 0x112   :  { %v148_v31 = vpop.f32.mrf.mxu1 }
 0x194   :  { %v229_v33 = vpop.f32.mrf.mxu2 }
 0x195   :  { %v230_v34 = vadd.f32 %v345_v32, %v229_v33 }
 0x197   :  { %234 = vst.msk [vmem:[#allocation2] sm:$0xff] %vm233_vm1, %v230_v34 }
 0x198   :  { %245 = dma.vmem_to_hbm [thread:$0]  %s241_s17, 128, %s243_s5, [#allocation3]  }
 0x19c   :  { %v231_v35 = vpop.f32.mrf.mxu2 }
 0x19d   :  { %370 = dma.done.wait [#allocation3], 128  }
 0x19e   :  { %371 = vsyncadd [#allocation3], 4294967168 }
 0x19f   :  { %250 = vsyncpa [#allocation3], 1 }

</bundles_post_ra>
